<compile_context>
chip_gen: v5e
topology: v5e:2x2
jax: 0.10.0
libtpu: 0.0.40
codegen_flags: <defaults>
</compile_context>

<pallas_src>
import math

import jax
import jax.numpy as jnp
from jax import lax
from jax.experimental import pallas as pl
from jax.experimental.pallas import tpu as pltpu

Z_DIM = 100      # generator latent dim
H_DIM = 256      # hidden dim
OUT_DIM = 784    # 28*28 output dim

Z_PAD = 128      # 100 -> 128  (lane-aligned K for layer 1; padded with zeros)
OUT_PAD = 896    # 784 -> 896 = 7*128 (unmasked lane-dense output stores)


def _round_up(v, m):
    return (v + m - 1) // m * m


# ----------------------------------------------------------------------------
# Fused kernel over one row tile:
#   tanh( relu( relu(x@W1+b1) @ W2 + b2 ) @ W3 + b3 )
# x / W* are bf16 (MXU), accumulation + bias + activations are f32 (VPU/EUP).
# The tile is split into `n_chunks` row sub-chunks so the activation tail of
# one chunk overlaps the matmuls of the next.
# ----------------------------------------------------------------------------
def _make_kernel(n_chunks, sub_m):
    def _chunk(c, refs):
        (x_ref, w1_ref, b1_ref, w2_ref, b2_ref, w3_ref, b3_ref, o_ref) = refs
        r = pl.multiple_of(c * sub_m, sub_m)
        xc = x_ref[pl.ds(r, sub_m), :]                               # bf16
        h = jnp.dot(xc, w1_ref[...], preferred_element_type=jnp.float32)
        h = jnp.maximum(h + b1_ref[...], 0.0)                        # f32 VPU
        h = jnp.dot(h.astype(jnp.bfloat16), w2_ref[...],
                    preferred_element_type=jnp.float32)
        h = jnp.maximum(h + b2_ref[...], 0.0)
        h = jnp.dot(h.astype(jnp.bfloat16), w3_ref[...],
                    preferred_element_type=jnp.float32)
        o_ref[pl.ds(r, sub_m), :] = jnp.tanh(h + b3_ref[...])        # f32 EUP

    def kernel(x_ref, w1_ref, b1_ref, w2_ref, b2_ref, w3_ref, b3_ref, o_ref):
        refs = (x_ref, w1_ref, b1_ref, w2_ref, b2_ref, w3_ref, b3_ref, o_ref)
        if n_chunks == 1:
            _chunk(0, refs)
        else:
            def body(c, carry):
                _chunk(c, refs)
                return carry
            lax.fori_loop(0, n_chunks, body, 0, unroll=True)

    return kernel


def generator_forward(params, x):
    """x: (batch, 100) f32 -> (batch, 784) f32, matching generator.forward."""
    M, K = x.shape
    assert K == Z_DIM, (M, K)

    # ---- row tiling: minimal sublane padding; >= 2 grid steps once Mp >= 256
    # so both v7x TensorCores are used; tiles up to 1024 rows (VMEM is ample).
    Mp = _round_up(M, 8)
    if Mp < 256:
        tile_m = Mp
    else:
        tile_m = min(1024, _round_up(-(-Mp // 2), 8))
        Mp = _round_up(Mp, tile_m)

    # Sub-chunk the row tile (sub_m multiple of 8, prefer >= 128 rows).
    n_chunks = 1
    for c in (4, 2):
        if tile_m % (8 * c) == 0 and tile_m // c >= 128:
            n_chunks = c
            break
    sub_m = tile_m // n_chunks

    # ---- operand prep: bf16 MXU inputs, zero-padded K (100->128) and
    # output N (784->896). Zero pads keep results bit-identical pre-slice.
    xf = x.astype(jnp.float32)
    xp = jnp.pad(xf, ((0, Mp - M), (0, Z_PAD - Z_DIM))).astype(jnp.bfloat16)

    w1 = jnp.pad(params["w1"],
                 ((0, Z_PAD - Z_DIM), (0, 0))).astype(jnp.bfloat16)
    w2 = params["w2"].astype(jnp.bfloat16)
    w3 = jnp.pad(params["w3"],
                 ((0, 0), (0, OUT_PAD - OUT_DIM))).astype(jnp.bfloat16)
    b1 = params["b1"].reshape(1, H_DIM).astype(jnp.float32)
    b2 = params["b2"].reshape(1, H_DIM).astype(jnp.float32)
    b3 = jnp.pad(params["b3"].astype(jnp.float32),
                 (0, OUT_PAD - OUT_DIM)).reshape(1, OUT_PAD)

    grid = (Mp // tile_m,)
    flops = 2 * Mp * (Z_PAD * H_DIM + H_DIM * H_DIM + H_DIM * OUT_PAD)
    bytes_accessed = (
        2 * (Mp * Z_PAD + Z_PAD * H_DIM + H_DIM * H_DIM + H_DIM * OUT_PAD)
        + 4 * (2 * H_DIM + OUT_PAD + Mp * OUT_PAD))

    out = pl.pallas_call(
        _make_kernel(n_chunks, sub_m),
        out_shape=jax.ShapeDtypeStruct((Mp, OUT_PAD), jnp.float32),
        grid_spec=pltpu.PrefetchScalarGridSpec(
            num_scalar_prefetch=0,
            grid=grid,
            in_specs=[
                pl.BlockSpec((tile_m, Z_PAD), lambda i: (i, 0)),    # x tile
                pl.BlockSpec((Z_PAD, H_DIM), lambda i: (0, 0)),     # W1 (full)
                pl.BlockSpec((1, H_DIM), lambda i: (0, 0)),         # b1
                pl.BlockSpec((H_DIM, H_DIM), lambda i: (0, 0)),     # W2 (full)
                pl.BlockSpec((1, H_DIM), lambda i: (0, 0)),         # b2
                pl.BlockSpec((H_DIM, OUT_PAD), lambda i: (0, 0)),   # W3 (full)
                pl.BlockSpec((1, OUT_PAD), lambda i: (0, 0)),       # b3
            ],
            out_specs=pl.BlockSpec((tile_m, OUT_PAD), lambda i: (i, 0)),
        ),
        compiler_params=pltpu.CompilerParams(
            dimension_semantics=("parallel",)),
        cost_estimate=pl.CostEstimate(
            flops=flops,
            transcendentals=Mp * OUT_PAD,       # tanh on the output tile
            bytes_accessed=bytes_accessed),
    )(xp, w1, b1, w2, b2, w3, b3)
    return out[:M, :OUT_DIM]


# ----------------------------------------------------------------------------
# Deterministic synthetic parameters (PyTorch nn.Linear default init:
# U(-1/sqrt(fan_in), 1/sqrt(fan_in))). Weights stored (in, out) — a real
# PyTorch checkpoint stores (out, in) and would need transposing.
# ----------------------------------------------------------------------------
def init_params(key):
    k1, k2, k3, k4, k5, k6 = jax.random.split(key, 6)

    def uni(k, shape, fan_in):
        bound = 1.0 / math.sqrt(fan_in)
        return jax.random.uniform(k, shape, jnp.float32, -bound, bound)

    return {
        "w1": uni(k1, (Z_DIM, H_DIM), Z_DIM),
        "b1": uni(k2, (H_DIM,), Z_DIM),
        "w2": uni(k3, (H_DIM, H_DIM), H_DIM),
        "b2": uni(k4, (H_DIM,), H_DIM),
        "w3": uni(k5, (H_DIM, OUT_DIM), H_DIM),
        "b3": uni(k6, (OUT_DIM,), H_DIM),
    }


def _reference(params, x):
    h = jnp.maximum(x @ params["w1"] + params["b1"], 0.0)
    h = jnp.maximum(h @ params["w2"] + params["b2"], 0.0)
    return jnp.tanh(h @ params["w3"] + params["b3"])


if __name__ == "__main__":
    root = jax.random.PRNGKey(0)
    pkey, xkey = jax.random.split(root, 2)
    params = init_params(pkey)
    # generator input: batch of latent vectors, z_dim = 100 (fixed by module).
    x = jax.random.normal(xkey, (2, Z_DIM), jnp.float32)

    fwd = jax.jit(generator_forward)
    y = jax.block_until_ready(fwd(params, x))

    assert y.shape == (2, OUT_DIM), y.shape
    assert bool(jnp.all(jnp.isfinite(y)))
    assert bool(jnp.all(jnp.abs(y) <= 1.0))          # tanh output range

    # bf16-matmul kernel vs f32 reference: generous but meaningful tolerance.
    y_ref = _reference(params, x)
    assert bool(jnp.max(jnp.abs(y - y_ref)) < 5e-2), float(
        jnp.max(jnp.abs(y - y_ref)))
    print("KERNEL_OK")
</pallas_src>

<mosaic_0001>
module attributes {stable_mosaic.version = 11 : i64} {
  func.func @kernel(%arg0: i32, %arg1: memref<8x128xbf16, #tpu.memory_space<vmem>>, %arg2: memref<128x256xbf16, #tpu.memory_space<vmem>>, %arg3: memref<1x256xf32, #tpu.memory_space<vmem>>, %arg4: memref<256x256xbf16, #tpu.memory_space<vmem>>, %arg5: memref<1x256xf32, #tpu.memory_space<vmem>>, %arg6: memref<256x896xbf16, #tpu.memory_space<vmem>>, %arg7: memref<1x896xf32, #tpu.memory_space<vmem>>, %arg8: memref<8x896xf32, #tpu.memory_space<vmem>>) attributes {dimension_semantics = [#tpu.dimension_semantics<parallel>], iteration_bounds = array<i64: 1>, scalar_prefetch = 0 : i64, scratch_operands = 0 : i64, tpu.core_type = #tpu.core_type<tc>, window_params = [{transform_indices = @transform_0, window_bounds = array<i64: 8, 128>}, {pipeline_mode = #tpu.pipeline_mode<synchronous>, transform_indices = @transform_1, window_bounds = array<i64: 128, 256>}, {pipeline_mode = #tpu.pipeline_mode<synchronous>, transform_indices = @transform_2, window_bounds = array<i64: 1, 256>}, {pipeline_mode = #tpu.pipeline_mode<synchronous>, transform_indices = @transform_3, window_bounds = array<i64: 256, 256>}, {pipeline_mode = #tpu.pipeline_mode<synchronous>, transform_indices = @transform_4, window_bounds = array<i64: 1, 256>}, {pipeline_mode = #tpu.pipeline_mode<synchronous>, transform_indices = @transform_5, window_bounds = array<i64: 256, 896>}, {pipeline_mode = #tpu.pipeline_mode<synchronous>, transform_indices = @transform_6, window_bounds = array<i64: 1, 896>}, {transform_indices = @transform_7, window_bounds = array<i64: 8, 896>}]} {
    %c0_i32 = arith.constant 0 : i32
    %0 = tpu.assume_multiple %c0_i32, 8 : i32
    %1 = arith.index_cast %0 : i32 to index
    %c0 = arith.constant 0 : index
    %2 = vector.load %arg1[%1, %c0] : memref<8x128xbf16, #tpu.memory_space<vmem>>, vector<8x128xbf16>
    %c0_0 = arith.constant 0 : index
    %c0_1 = arith.constant 0 : index
    %3 = vector.load %arg2[%c0_0, %c0_1] : memref<128x256xbf16, #tpu.memory_space<vmem>>, vector<128x256xbf16>
    %cst = arith.constant dense<0.000000e+00> : vector<8x256xf32>
    %4 = tpu.matmul %2, %3, %cst {dimension_numbers = #tpu.dot_dimension_numbers<[1], [0], [0], [1], [0, 0, 1, 1], [], []>} : vector<8x128xbf16>, vector<128x256xbf16>, vector<8x256xf32> -> vector<8x256xf32>
    %c0_2 = arith.constant 0 : index
    %c0_3 = arith.constant 0 : index
    %5 = vector.load %arg3[%c0_2, %c0_3] : memref<1x256xf32, #tpu.memory_space<vmem>>, vector<1x256xf32>
    %6 = vector.broadcast %5 : vector<1x256xf32> to vector<8x256xf32>
    %7 = arith.addf %4, %6 : vector<8x256xf32>
    %cst_4 = arith.constant 0.000000e+00 : f32
    %8 = vector.broadcast %cst_4 : f32 to vector<8x256xf32>
    %9 = arith.maximumf %7, %8 : vector<8x256xf32>
    %10 = arith.truncf %9 : vector<8x256xf32> to vector<8x256xbf16>
    %c0_5 = arith.constant 0 : index
    %c0_6 = arith.constant 0 : index
    %11 = vector.load %arg4[%c0_5, %c0_6] : memref<256x256xbf16, #tpu.memory_space<vmem>>, vector<256x256xbf16>
    %cst_7 = arith.constant dense<0.000000e+00> : vector<8x256xf32>
    %12 = tpu.matmul %10, %11, %cst_7 {dimension_numbers = #tpu.dot_dimension_numbers<[1], [0], [0], [1], [0, 0, 1, 1], [], []>} : vector<8x256xbf16>, vector<256x256xbf16>, vector<8x256xf32> -> vector<8x256xf32>
    %c0_8 = arith.constant 0 : index
    %c0_9 = arith.constant 0 : index
    %13 = vector.load %arg5[%c0_8, %c0_9] : memref<1x256xf32, #tpu.memory_space<vmem>>, vector<1x256xf32>
    %14 = vector.broadcast %13 : vector<1x256xf32> to vector<8x256xf32>
    %15 = arith.addf %12, %14 : vector<8x256xf32>
    %cst_10 = arith.constant 0.000000e+00 : f32
    %16 = vector.broadcast %cst_10 : f32 to vector<8x256xf32>
    %17 = arith.maximumf %15, %16 : vector<8x256xf32>
    %18 = arith.truncf %17 : vector<8x256xf32> to vector<8x256xbf16>
    %c0_11 = arith.constant 0 : index
    %c0_12 = arith.constant 0 : index
    %19 = vector.load %arg6[%c0_11, %c0_12] : memref<256x896xbf16, #tpu.memory_space<vmem>>, vector<256x896xbf16>
    %cst_13 = arith.constant dense<0.000000e+00> : vector<8x896xf32>
    %20 = tpu.matmul %18, %19, %cst_13 {dimension_numbers = #tpu.dot_dimension_numbers<[1], [0], [0], [1], [0, 0, 1, 1], [], []>} : vector<8x256xbf16>, vector<256x896xbf16>, vector<8x896xf32> -> vector<8x896xf32>
    %c0_14 = arith.constant 0 : index
    %c0_15 = arith.constant 0 : index
    %21 = vector.load %arg7[%c0_14, %c0_15] : memref<1x896xf32, #tpu.memory_space<vmem>>, vector<1x896xf32>
    %22 = vector.broadcast %21 : vector<1x896xf32> to vector<8x896xf32>
    %23 = arith.addf %20, %22 : vector<8x896xf32>
    %24 = math.tanh %23 : vector<8x896xf32>
    %25 = arith.index_cast %0 : i32 to index
    %c0_16 = arith.constant 0 : index
    %26 = vector.load %arg8[%25, %c0_16] : memref<8x896xf32, #tpu.memory_space<vmem>>, vector<8x896xf32>
    tpu.vector_store %arg8[%25, %c0_16], %24 {strides = array<i32>} : memref<8x896xf32, #tpu.memory_space<vmem>>, vector<8x896xf32>,
    return
  }
  func.func @transform_0(%arg0: i32) -> (i32, i32) {
    %c0_i32 = arith.constant 0 : i32
    %c0_i32_0 = arith.constant 0 : i32
    return %arg0, %c0_i32 : i32, i32
  }
  func.func @transform_1(%arg0: i32) -> (i32, i32) {
    %c0_i32 = arith.constant 0 : i32
    %c0_i32_0 = arith.constant 0 : i32
    %c0_i32_1 = arith.constant 0 : i32
    return %c0_i32, %c0_i32_0 : i32, i32
  }
  func.func @transform_2(%arg0: i32) -> (i32, i32) {
    %c0_i32 = arith.constant 0 : i32
    %c0_i32_0 = arith.constant 0 : i32
    %c0_i32_1 = arith.constant 0 : i32
    return %c0_i32, %c0_i32_0 : i32, i32
  }
  func.func @transform_3(%arg0: i32) -> (i32, i32) {
    %c0_i32 = arith.constant 0 : i32
    %c0_i32_0 = arith.constant 0 : i32
    %c0_i32_1 = arith.constant 0 : i32
    return %c0_i32, %c0_i32_0 : i32, i32
  }
  func.func @transform_4(%arg0: i32) -> (i32, i32) {
    %c0_i32 = arith.constant 0 : i32
    %c0_i32_0 = arith.constant 0 : i32
    %c0_i32_1 = arith.constant 0 : i32
    return %c0_i32, %c0_i32_0 : i32, i32
  }
  func.func @transform_5(%arg0: i32) -> (i32, i32) {
    %c0_i32 = arith.constant 0 : i32
    %c0_i32_0 = arith.constant 0 : i32
    %c0_i32_1 = arith.constant 0 : i32
    return %c0_i32, %c0_i32_0 : i32, i32
  }
  func.func @transform_6(%arg0: i32) -> (i32, i32) {
    %c0_i32 = arith.constant 0 : i32
    %c0_i32_0 = arith.constant 0 : i32
    %c0_i32_1 = arith.constant 0 : i32
    return %c0_i32, %c0_i32_0 : i32, i32
  }
  func.func @transform_7(%arg0: i32) -> (i32, i32) {
    %c0_i32 = arith.constant 0 : i32
    %c0_i32_0 = arith.constant 0 : i32
    return %arg0, %c0_i32 : i32, i32
  }
}

</mosaic_0001>

<bundles_post_ra>
// kernel: generator_forward.1
= control target key start
LH: loop header
LB: loop body
LE: loop exit
PB: predicated region body
PF: predicated region fallthrough
CT: control target
= control target key end

     0   :  { %s3210_s1 = inlined_call_operand.vmem [shape: bf16[128,256], index: 1, kind: input, shape index: {}]   ;;  %s3211_s3 = inlined_call_operand.vmem [shape: bf16[256,256], index: 3, kind: input, shape index: {}]   ;;  %s3212_s0 = inlined_call_operand.vmem [shape: bf16[8,128], index: 0, kind: input, shape index: {}]   ;;  %s3213_s5 = inlined_call_operand.vmem [shape: bf16[256,896], index: 5, kind: input, shape index: {}]   ;;  %s3214_s2 = inlined_call_operand.vmem [shape: f32[1,256], index: 2, kind: input, shape index: {}]   ;;  %s3215_s4 = inlined_call_operand.vmem [shape: f32[1,256], index: 4, kind: input, shape index: {}]   ;;  %s3216_s6 = inlined_call_operand.vmem [shape: f32[1,896], index: 6, kind: input, shape index: {}]   ;;  %s3217_s7 = inlined_call_operand.vmem [shape: f32[8,896], index: 7, kind: output, shape index: {}]  }
   0x1   :  { %v1394_v0 = vld [vmem:[%s3210_s1 + $0x70] sm:$0xf]  ;;  %v1991_v1 = vld [vmem:[%s3210_s1 + $0x74] sm:$0xf0]  ;;  %v1990_v2 = vld [vmem:[%s3210_s1 + $0x74] sm:$0xf] }
   0x2   :  { %v1395_v3 = vor.u32 %v1991_v1, %v1394_v0  ;;  %v1396_v4 = vld [vmem:[%s3210_s1 + $0x78] sm:$0xf0]  ;;  %v1386_v5 = vld [vmem:[%s3210_s1 + $0x60] sm:$0xf]  ;;  %v1989_v6 = vld [vmem:[%s3210_s1 + $0x64] sm:$0xf0] }
   0x3   :  { %v1399_v7 = vor.u32 %v1990_v2, %v1396_v4  ;;  %v1988_v8 = vld [vmem:[%s3210_s1 + $0x64] sm:$0xf]  ;;  %v1388_v9 = vld [vmem:[%s3210_s1 + $0x68] sm:$0xf0]  ;;  %v1387_v10 = vor.u32 %v1989_v6, %v1386_v5  ;;  %v1378_v12 = vld [vmem:[%s3210_s1 + $0x50] sm:$0xf] }
   0x4   :  { %129 = vmatpush.bf16.msra.mxu0 %v1395_v3  ;;  %v1391_v11 = vor.u32 %v1988_v8, %v1388_v9  ;;  %v1987_v13 = vld [vmem:[%s3210_s1 + $0x54] sm:$0xf0]  ;;  %v1986_v14 = vld [vmem:[%s3210_s1 + $0x54] sm:$0xf]  ;;  %v1380_v15 = vld [vmem:[%s3210_s1 + $0x58] sm:$0xf0] }
   0x5   :  { %142 = vmatpush.bf16.msra.mxu1 %v1399_v7  ;;  %v1379_v16 = vor.u32 %v1987_v13, %v1378_v12  ;;  %v1383_v17 = vor.u32 %v1986_v14, %v1380_v15  ;;  %v1370_v18 = vld [vmem:[%s3210_s1 + $0x40] sm:$0xf]  ;;  %v1985_v19 = vld [vmem:[%s3210_s1 + $0x44] sm:$0xf0]  ;;  %v1984_v20 = vld [vmem:[%s3210_s1 + $0x44] sm:$0xf] }
   0x6   :  { %v1372_v21 = vld [vmem:[%s3210_s1 + $0x48] sm:$0xf0]  ;;  %v1371_v22 = vor.u32 %v1985_v19, %v1370_v18  ;;  %v1458_v23 = vld [vmem:[%s3211_s3 + $0x70] sm:$0xf]  ;;  %v2007_v24 = vld [vmem:[%s3211_s3 + $0x74] sm:$0xf0] }
   0x7   :  { %v1522_v25 = vld [vmem:[%s3211_s3 + $0xf0] sm:$0xf]  ;;  %v1375_v26 = vor.u32 %v1984_v20, %v1372_v21  ;;  %v1983_v28 = vld [vmem:[%s3210_s1 + $0x34] sm:$0xf0]  ;;  %v1459_v29 = vor.u32 %v2007_v24, %v1458_v23  ;;  %v1982_v31 = vld [vmem:[%s3210_s1 + $0x34] sm:$0xf] }
   0x8   :  { %130 = vmatpush.bf16.msra.mxu0 %v1387_v10  ;;  %v1362_v27 = vld [vmem:[%s3210_s1 + $0x30] sm:$0xf]  ;;  %v2023_v30 = vld [vmem:[%s3211_s3 + $0xf4] sm:$0xf0]  ;;  %v1364_v32 = vld [vmem:[%s3210_s1 + $0x38] sm:$0xf0] }
   0x9   :  { %143 = vmatpush.bf16.msra.mxu1 %v1391_v11  ;;  %v1523_v33 = vor.u32 %v2023_v30, %v1522_v25  ;;  %v1450_v34 = vld [vmem:[%s3211_s3 + $0x60] sm:$0xf]  ;;  %357 = vmatpush.bf16.msra.mxu2 %v1459_v29  ;;  %v2005_v35 = vld [vmem:[%s3211_s3 + $0x64] sm:$0xf0]  ;;  %v1363_v38 = vor.u32 %v1983_v28, %v1362_v27  ;;  %v1367_v43 = vor.u32 %v1982_v31, %v1364_v32  ;;  %v1980_v44 = vld [vmem:[%s3210_s1 + $0x24] sm:$0xf] }
   0xa   :  { %v1514_v36 = vld [vmem:[%s3211_s3 + $0xe0] sm:$0xf]  ;;  %v2021_v37 = vld [vmem:[%s3211_s3 + $0xe4] sm:$0xf0]  ;;  %v1451_v41 = vor.u32 %v2005_v35, %v1450_v34  ;;  %v1442_v45 = vld [vmem:[%s3211_s3 + $0x50] sm:$0xf] }
   0xb   :  { %v1354_v39 = vld [vmem:[%s3210_s1 + $0x20] sm:$0xf]  ;;  %v1981_v40 = vld [vmem:[%s3210_s1 + $0x24] sm:$0xf0]  ;;  %370 = vmatpush.bf16.msra.mxu3 %v1523_v33  ;;  %v1515_v42 = vor.u32 %v2021_v37, %v1514_v36  ;;  %v2003_v46 = vld [vmem:[%s3211_s3 + $0x54] sm:$0xf0] }
   0xc   :  { %131 = vmatpush.bf16.msra.mxu0 %v1379_v16  ;;  %v1356_v47 = vld [vmem:[%s3210_s1 + $0x28] sm:$0xf0]  ;;  %v1506_v48 = vld [vmem:[%s3211_s3 + $0xd0] sm:$0xf]  ;;  %v2019_v49 = vld [vmem:[%s3211_s3 + $0xd4] sm:$0xf0]  ;;  %v1443_v50 = vor.u32 %v2003_v46, %v1442_v45  ;;  %v1355_v51 = vor.u32 %v1981_v40, %v1354_v39 }
   0xd   :  { %144 = vmatpush.bf16.msra.mxu1 %v1383_v17  ;;  %358 = vmatpush.bf16.msra.mxu2 %v1451_v41  ;;  %v1346_v52 = vld [vmem:[%s3210_s1 + $0x10] sm:$0xf]  ;;  %v1507_v53 = vor.u32 %v2019_v49, %v1506_v48  ;;  %v1434_v54 = vld [vmem:[%s3211_s3 + $0x40] sm:$0xf]  ;;  %v2001_v55 = vld [vmem:[%s3211_s3 + $0x44] sm:$0xf0]  ;;  %v1359_v56 = vor.u32 %v1980_v44, %v1356_v47 }
   0xe   :  { %v1979_v57 = vld [vmem:[%s3210_s1 + $0x14] sm:$0xf0]  ;;  %v1498_v58 = vld [vmem:[%s3211_s3 + $0xc0] sm:$0xf]  ;;  %v2017_v59 = vld [vmem:[%s3211_s3 + $0xc4] sm:$0xf0]  ;;  %v1435_v63 = vor.u32 %v2001_v55, %v1434_v54 }
   0xf   :  { %371 = vmatpush.bf16.msra.mxu3 %v1515_v42  ;;  %v1978_v60 = vld [vmem:[%s3210_s1 + $0x14] sm:$0xf]  ;;  %v1348_v61 = vld [vmem:[%s3210_s1 + $0x18] sm:$0xf0]  ;;  %v1338_v62 = vld [vmem:[%s3210_s1] sm:$0xf]  ;;  %v1347_v0 = vor.u32 %v1979_v57, %v1346_v52  ;;  %v1499_v2 = vor.u32 %v2017_v59, %v1498_v58 }
  0x10   :  { %132 = vmatpush.bf16.msra.mxu0 %v1371_v22  ;;  %v1977_v1 = vld [vmem:[%s3210_s1 + $0x4] sm:$0xf0]  ;;  %v1426_v3 = vld [vmem:[%s3211_s3 + $0x30] sm:$0xf]  ;;  %v1999_v4 = vld [vmem:[%s3211_s3 + $0x34] sm:$0xf0]  ;;  %v1351_v5 = vor.u32 %v1978_v60, %v1348_v61 }
  0x11   :  { %145 = vmatpush.bf16.msra.mxu1 %v1375_v26  ;;  %359 = vmatpush.bf16.msra.mxu2 %v1443_v50  ;;  %v1976_v6 = vld [vmem:[%s3210_s1 + $0x4] sm:$0xf]  ;;  %v1490_v7 = vld [vmem:[%s3211_s3 + $0xb0] sm:$0xf]  ;;  %v2015_v8 = vld [vmem:[%s3211_s3 + $0xb4] sm:$0xf0]  ;;  %v1427_v14 = vor.u32 %v1999_v4, %v1426_v3  ;;  %v1339_v15 = vor.u32 %v1977_v1, %v1338_v62 }
  0x12   :  { %v1340_v9 = vld [vmem:[%s3210_s1 + $0x8] sm:$0xf0]  ;;  %v2006_v10 = vld [vmem:[%s3211_s3 + $0x74] sm:$0xf]  ;;  %v1460_v11 = vld [vmem:[%s3211_s3 + $0x78] sm:$0xf0]  ;;  %v1491_v16 = vor.u32 %v2015_v8, %v1490_v7 }
  0x13   :  { %372 = vmatpush.bf16.msra.mxu3 %v1507_v53  ;;  %v2022_v12 = vld [vmem:[%s3211_s3 + $0xf4] sm:$0xf]  ;;  %v1524_v13 = vld [vmem:[%s3211_s3 + $0xf8] sm:$0xf0]  ;;  %v1418_v17 = vld [vmem:[%s3211_s3 + $0x20] sm:$0xf]  ;;  %v1343_v19 = vor.u32 %v1976_v6, %v1340_v9  ;;  %v1463_v20 = vor.u32 %v2006_v10, %v1460_v11 }
  0x14   :  { %133 = vmatpush.bf16.msra.mxu0 %v1363_v38  ;;  %v1997_v18 = vld [vmem:[%s3211_s3 + $0x24] sm:$0xf0]  ;;  %v1482_v21 = vld [vmem:[%s3211_s3 + $0xa0] sm:$0xf]  ;;  %v1527_v23 = vor.u32 %v2022_v12, %v1524_v13  ;;  %v2004_v24 = vld [vmem:[%s3211_s3 + $0x64] sm:$0xf] }
  0x15   :  { %146 = vmatpush.bf16.msra.mxu1 %v1367_v43  ;;  %360 = vmatpush.bf16.msra.mxu2 %v1435_v63  ;;  %v2013_v22 = vld [vmem:[%s3211_s3 + $0xa4] sm:$0xf0]  ;;  %v1452_v25 = vld [vmem:[%s3211_s3 + $0x68] sm:$0xf0]  ;;  %v2020_v26 = vld [vmem:[%s3211_s3 + $0xe4] sm:$0xf]  ;;  %v1419_v28 = vor.u32 %v1997_v18, %v1418_v17 }
  0x16   :  { %v1516_v27 = vld [vmem:[%s3211_s3 + $0xe8] sm:$0xf0]  ;;  %v26_v29 = vld [vmem:[%s3212_s0] sm:$0xf]  ;;  %v1483_v30 = vor.u32 %v2013_v22, %v1482_v21  ;;  %v1455_v31 = vor.u32 %v2004_v24, %v1452_v25  ;;  %v2002_v33 = vld [vmem:[%s3211_s3 + $0x54] sm:$0xf] }
  0x17   :  { %373 = vmatpush.bf16.msra.mxu3 %v1499_v2  ;;  %v1519_v32 = vor.u32 %v2020_v26, %v1516_v27  ;;  %v1444_v34 = vld [vmem:[%s3211_s3 + $0x58] sm:$0xf0]  ;;  %v2018_v35 = vld [vmem:[%s3211_s3 + $0xd4] sm:$0xf]  ;;  %v2000_v39 = vld [vmem:[%s3211_s3 + $0x44] sm:$0xf] }
  0x18   :  { %134 = vmatpush.bf16.msra.mxu0 %v1355_v51  ;;  %v1508_v36 = vld [vmem:[%s3211_s3 + $0xd8] sm:$0xf0]  ;;  %v1447_v37 = vor.u32 %v2002_v33, %v1444_v34  ;;  %v1436_v40 = vld [vmem:[%s3211_s3 + $0x48] sm:$0xf0]  ;;  %v2016_v41 = vld [vmem:[%s3211_s3 + $0xc4] sm:$0xf] }
  0x19   :  { %147 = vmatpush.bf16.msra.mxu1 %v1359_v56  ;;  %361 = vmatpush.bf16.msra.mxu2 %v1427_v14  ;;  %v1511_v38 = vor.u32 %v2018_v35, %v1508_v36  ;;  %v1500_v42 = vld [vmem:[%s3211_s3 + $0xc8] sm:$0xf0]  ;;  %v1439_v43 = vor.u32 %v2000_v39, %v1436_v40  ;;  %v1998_v45 = vld [vmem:[%s3211_s3 + $0x34] sm:$0xf]  ;;  %v1428_v46 = vld [vmem:[%s3211_s3 + $0x38] sm:$0xf0] }
  0x1a   :  { %v1503_v44 = vor.u32 %v2016_v41, %v1500_v42  ;;  %v2014_v47 = vld [vmem:[%s3211_s3 + $0xb4] sm:$0xf]  ;;  %v1492_v48 = vld [vmem:[%s3211_s3 + $0xb8] sm:$0xf0]  ;;  %v1431_v49 = vor.u32 %v1998_v45, %v1428_v46  ;;  %v1996_v51 = vld [vmem:[%s3211_s3 + $0x24] sm:$0xf] }
  0x1b   :  { %374 = vmatpush.bf16.msra.mxu3 %v1491_v16  ;;  %v1495_v50 = vor.u32 %v2014_v47, %v1492_v48  ;;  %v1420_v52 = vld [vmem:[%s3211_s3 + $0x28] sm:$0xf0]  ;;  %v2012_v53 = vld [vmem:[%s3211_s3 + $0xa4] sm:$0xf]  ;;  %v1410_v57 = vld [vmem:[%s3211_s3 + $0x10] sm:$0xf] }
  0x1c   :  { %135 = vmatpush.bf16.msra.mxu0 %v1347_v0  ;;  %v1484_v54 = vld [vmem:[%s3211_s3 + $0xa8] sm:$0xf0]  ;;  %v1423_v55 = vor.u32 %v1996_v51, %v1420_v52  ;;  %v1995_v58 = vld [vmem:[%s3211_s3 + $0x14] sm:$0xf0]  ;;  %v1474_v59 = vld [vmem:[%s3211_s3 + $0x90] sm:$0xf] }
  0x1d   :  { %148 = vmatpush.bf16.msra.mxu1 %v1351_v5  ;;  %362 = vmatpush.bf16.msra.mxu2 %v1419_v28  ;;  %v1487_v56 = vor.u32 %v2012_v53, %v1484_v54  ;;  %v1411_v60 = vor.u32 %v1995_v58, %v1410_v57  ;;  %v2011_v61 = vld [vmem:[%s3211_s3 + $0x94] sm:$0xf0]  ;;  %v1994_v62 = vld [vmem:[%s3211_s3 + $0x14] sm:$0xf]  ;;  %v1412_v63 = vld [vmem:[%s3211_s3 + $0x18] sm:$0xf0] }
  0x1e   :  { %v1475_v0 = vor.u32 %v2011_v61, %v1474_v59  ;;  %v1415_v1 = vor.u32 %v1994_v62, %v1412_v63  ;;  %v2010_v2 = vld [vmem:[%s3211_s3 + $0x94] sm:$0xf]  ;;  %v1476_v3 = vld [vmem:[%s3211_s3 + $0x98] sm:$0xf0]  ;;  %v1402_v5 = vld [vmem:[%s3211_s3] sm:$0xf] }
  0x1f   :  { %375 = vmatpush.bf16.msra.mxu3 %v1483_v30  ;;  %v1479_v4 = vor.u32 %v2010_v2, %v1476_v3  ;;  %v1993_v6 = vld [vmem:[%s3211_s3 + $0x4] sm:$0xf0]  ;;  %v1466_v7 = vld [vmem:[%s3211_s3 + $0x80] sm:$0xf]  ;;  %v1992_v10 = vld [vmem:[%s3211_s3 + $0x4] sm:$0xf] }
  0x20   :  { %136 = vmatpush.bf16.msra.mxu0 %v1339_v15  ;;  %v1403_v8 = vor.u32 %v1993_v6, %v1402_v5  ;;  %v2009_v9 = vld [vmem:[%s3211_s3 + $0x84] sm:$0xf0]  ;;  %v1404_v11 = vld [vmem:[%s3211_s3 + $0x8] sm:$0xf0]  ;;  %v2008_v14 = vld [vmem:[%s3211_s3 + $0x84] sm:$0xf] }
  0x21   :  { %149 = vmatpush.bf16.msra.mxu1 %v1343_v19  ;;  %363 = vmatpush.bf16.msra.mxu2 %v1411_v60  ;;  %v1467_v12 = vor.u32 %v2009_v9, %v1466_v7  ;;  %v1407_v13 = vor.u32 %v1992_v10, %v1404_v11  ;;  %v1468_v15 = vld [vmem:[%s3211_s3 + $0x88] sm:$0xf0]  ;;  %v1950_v17 = vld [vmem:[%s3213_s5 + $0x348] sm:$0xf]  ;;  %v2132_v18 = vld [vmem:[%s3213_s5 + $0x360] sm:$0xf0] }
  0x22   :  { %v1471_v16 = vor.u32 %v2008_v14, %v1468_v15  ;;  %v2129_v19 = vld [vmem:[%s3213_s5 + $0x34c] sm:$0xf]  ;;  %v1952_v21 = vld [vmem:[%s3213_s5 + $0x364] sm:$0xf0]  ;;  %v1922_v22 = vld [vmem:[%s3213_s5 + $0x310] sm:$0xf] }
  0x23   :  { %137 = vmatmul.bf16.vlgmr.msra.gmra.mxu0 %v26_v29  ;;  %376 = vmatpush.bf16.msra.mxu3 %v1475_v0  ;;  %v1955_v24 = vor.u32 %v2129_v19, %v1952_v21  ;;  %v2122_v25 = vld [vmem:[%s3213_s5 + $0x314] sm:$0xf]  ;;  %v1924_v26 = vld [vmem:[%s3213_s5 + $0x32c] sm:$0xf0]  ;;  %v1726_v27 = vld [vmem:[%s3213_s5 + $0x188] sm:$0xf] }
  0x24   :  { %383 = vmatpush.bf16.msrb.mxu0 %v1463_v20  ;;  %150 = vmatmul.bf16.vlgmr.msra.gmra.mxu1 %v26_v29  ;;  %v1951_v20 = vor.u32 %v2132_v18, %v1950_v17  ;;  %v2076_v29 = vld [vmem:[%s3213_s5 + $0x1a0] sm:$0xf0]  ;;  %v2073_v30 = vld [vmem:[%s3213_s5 + $0x18c] sm:$0xf]  ;;  %v1894_v35 = vld [vmem:[%s3213_s5 + $0x2d8] sm:$0xf] }
  0x25   :  { %396 = vmatpush.bf16.msrb.mxu1 %v1527_v23  ;;  %364 = vmatpush.bf16.msra.mxu2 %v1403_v8  ;;  %v2125_v23 = vld [vmem:[%s3213_s5 + $0x328] sm:$0xf0]  ;;  %v1727_v33 = vor.u32 %v2076_v29, %v1726_v27  ;;  %v2118_v36 = vld [vmem:[%s3213_s5 + $0x2f0] sm:$0xf0]  ;;  %v1698_v39 = vld [vmem:[%s3213_s5 + $0x150] sm:$0xf] }
  0x26   :  { %v1923_v28 = vor.u32 %v2125_v23, %v1922_v22  ;;  %v2069_v40 = vld [vmem:[%s3213_s5 + $0x168] sm:$0xf0]  ;;  %v2066_v42 = vld [vmem:[%s3213_s5 + $0x154] sm:$0xf]  ;;  %v1866_v46 = vld [vmem:[%s3213_s5 + $0x2a0] sm:$0xf] }
  0x27   :  { %377 = vmatpush.bf16.msra.mxu3 %v1467_v12  ;;  %v1699_v41 = vor.u32 %v2069_v40, %v1698_v39  ;;  %v2111_v47 = vld [vmem:[%s3213_s5 + $0x2b8] sm:$0xf0]  ;;  %v2108_v52 = vld [vmem:[%s3213_s5 + $0x2a4] sm:$0xf]  ;;  %v1868_v53 = vld [vmem:[%s3213_s5 + $0x2bc] sm:$0xf0] }
  0x28   :  { %384 = vmatpush.bf16.msrb.mxu0 %v1455_v31  ;;  %v1728_v31 = vld [vmem:[%s3213_s5 + $0x1a4] sm:$0xf0]  ;;  %v2059_v51 = vld [vmem:[%s3213_s5 + $0x11c] sm:$0xf]  ;;  %v1672_v54 = vld [vmem:[%s3213_s5 + $0x134] sm:$0xf0]  ;;  %v1867_v58 = vor.u32 %v2111_v47, %v1866_v46  ;;  %v1871_v62 = vor.u32 %v2108_v52, %v1868_v53 }
  0x29   :  { %397 = vmatpush.bf16.msrb.mxu1 %v1519_v32  ;;  %v1927_v32 = vor.u32 %v2122_v25, %v1924_v26  ;;  %v1731_v34 = vor.u32 %v2073_v30, %v1728_v31  ;;  %1133 = vmatpush.bf16.msrb.mxu2 %v1727_v33  ;;  %v1642_v57 = vld [vmem:[%s3213_s5 + $0xe0] sm:$0xf]  ;;  %v2055_v59 = vld [vmem:[%s3213_s5 + $0xf8] sm:$0xf0]  ;;  %v2052_v60 = vld [vmem:[%s3213_s5 + $0xe4] sm:$0xf] }
  0x2a   :  { %v1644_v61 = vld [vmem:[%s3213_s5 + $0xfc] sm:$0xf0]  ;;  %v1838_v63 = vld [vmem:[%s3213_s5 + $0x268] sm:$0xf]  ;;  %v2104_v0 = vld [vmem:[%s3213_s5 + $0x280] sm:$0xf0]  ;;  %v1643_v3 = vor.u32 %v2055_v59, %v1642_v57 }
  0x2b   :  { %1146 = vmatpush.bf16.msrb.mxu3 %v1951_v20  ;;  %v1840_v2 = vld [vmem:[%s3213_s5 + $0x284] sm:$0xf0]  ;;  %v1839_v6 = vor.u32 %v2104_v0, %v1838_v63  ;;  %v2048_v7 = vld [vmem:[%s3213_s5 + $0xc0] sm:$0xf0]  ;;  %v2045_v8 = vld [vmem:[%s3213_s5 + $0xac] sm:$0xf] }
  0x2c   :  { %385 = vmatpush.bf16.msrb.mxu0 %v1447_v37  ;;  %v2115_v37 = vld [vmem:[%s3213_s5 + $0x2dc] sm:$0xf]  ;;  %v1614_v5 = vld [vmem:[%s3213_s5 + $0xa8] sm:$0xf]  ;;  %v1810_v11 = vld [vmem:[%s3213_s5 + $0x230] sm:$0xf] }
  0x2d   :  { %398 = vmatpush.bf16.msrb.mxu1 %v1511_v38  ;;  %v1896_v38 = vld [vmem:[%s3213_s5 + $0x2f4] sm:$0xf0]  ;;  %1134 = vmatpush.bf16.msrb.mxu2 %v1699_v41  ;;  %v1616_v9 = vld [vmem:[%s3213_s5 + $0xc4] sm:$0xf0]  ;;  %v2097_v12 = vld [vmem:[%s3213_s5 + $0x248] sm:$0xf0] }
  0x2e   :  { %v1899_v48 = vor.u32 %v2115_v37, %v1896_v38  ;;  %v2094_v14 = vld [vmem:[%s3213_s5 + $0x234] sm:$0xf]  ;;  %v1812_v15 = vld [vmem:[%s3213_s5 + $0x24c] sm:$0xf0]  ;;  %v1619_v17 = vor.u32 %v2045_v8, %v1616_v9  ;;  %v1811_v19 = vor.u32 %v2097_v12, %v1810_v11  ;;  %v2041_v20 = vld [vmem:[%s3213_s5 + $0x88] sm:$0xf0] }
  0x2f   :  { %1147 = vmatpush.bf16.msrb.mxu3 %v1923_v28  ;;  %v1586_v18 = vld [vmem:[%s3213_s5 + $0x70] sm:$0xf]  ;;  %v2038_v21 = vld [vmem:[%s3213_s5 + $0x74] sm:$0xf]  ;;  %v1782_v25 = vld [vmem:[%s3213_s5 + $0x1f8] sm:$0xf] }
  0x30   :  { %386 = vmatpush.bf16.msrb.mxu0 %v1439_v43  ;;  %v1700_v43 = vld [vmem:[%s3213_s5 + $0x16c] sm:$0xf0]  ;;  %v2090_v26 = vld [vmem:[%s3213_s5 + $0x210] sm:$0xf0]  ;;  %v2087_v28 = vld [vmem:[%s3213_s5 + $0x1fc] sm:$0xf]  ;;  %v1587_v30 = vor.u32 %v2041_v20, %v1586_v18 }
  0x31   :  { %399 = vmatpush.bf16.msrb.mxu1 %v1503_v44  ;;  %v1895_v44 = vor.u32 %v2118_v36, %v1894_v35  ;;  %v1703_v45 = vor.u32 %v2066_v42, %v1700_v43  ;;  %v1588_v22 = vld [vmem:[%s3213_s5 + $0x8c] sm:$0xf0]  ;;  %v1784_v29 = vld [vmem:[%s3213_s5 + $0x214] sm:$0xf0]  ;;  %v1783_v33 = vor.u32 %v2090_v26, %v1782_v25  ;;  %v2083_v35 = vld [vmem:[%s3213_s5 + $0x1d8] sm:$0xf0] }
  0x32   :  { %v1591_v31 = vor.u32 %v2038_v21, %v1588_v22  ;;  %v1787_v38 = vor.u32 %v2087_v28, %v1784_v29  ;;  %v2080_v39 = vld [vmem:[%s3213_s5 + $0x1c4] sm:$0xf]  ;;  %v1756_v40 = vld [vmem:[%s3213_s5 + $0x1dc] sm:$0xf0]  ;;  %v1958_v41 = vld [vmem:[%s3213_s5 + $0x350] sm:$0xf] }
  0x33   :  { %1148 = vmatpush.bf16.msrb.mxu3 %v1895_v44  ;;  %v2133_v43 = vld [vmem:[%s3213_s5 + $0x368] sm:$0xf0]  ;;  %v1558_v44 = vld [vmem:[%s3213_s5 + $0x38] sm:$0xf]  ;;  %v2130_v47 = vld [vmem:[%s3213_s5 + $0x354] sm:$0xf] }
  0x34   :  { %387 = vmatpush.bf16.msrb.mxu0 %v1431_v49  ;;  %v1670_v49 = vld [vmem:[%s3213_s5 + $0x118] sm:$0xf]  ;;  %v2126_v59 = vld [vmem:[%s3213_s5 + $0x330] sm:$0xf0]  ;;  %v2027_v63 = vld [vmem:[%s3213_s5 + $0x18] sm:$0xf0] }
  0x35   :  { %400 = vmatpush.bf16.msrb.mxu1 %v1495_v50  ;;  %v2062_v50 = vld [vmem:[%s3213_s5 + $0x130] sm:$0xf0]  ;;  %v2123_v0 = vld [vmem:[%s3213_s5 + $0x31c] sm:$0xf]  ;;  %v1736_v9 = vld [vmem:[%s3213_s5 + $0x1ac] sm:$0xf0] }
  0x36   :  { %v2074_v8 = vld [vmem:[%s3213_s5 + $0x194] sm:$0xf]  ;;  %v2116_v18 = vld [vmem:[%s3213_s5 + $0x2e4] sm:$0xf]  ;;  %v1706_v20 = vld [vmem:[%s3213_s5 + $0x158] sm:$0xf] }
  0x37   :  { %1149 = vmatpush.bf16.msrb.mxu3 %v1867_v58  ;;  %v1930_v58 = vld [vmem:[%s3213_s5 + $0x318] sm:$0xf]  ;;  %v2070_v21 = vld [vmem:[%s3213_s5 + $0x170] sm:$0xf0]  ;;  %v2067_v22 = vld [vmem:[%s3213_s5 + $0x15c] sm:$0xf] }
  0x38   :  { %388 = vmatpush.bf16.msrb.mxu0 %v1423_v55  ;;  %v1671_v55 = vor.u32 %v2062_v50, %v1670_v49  ;;  %v2031_v50 = vld [vmem:[%s3213_s5 + $0x3c] sm:$0xf]  ;;  %v1874_v26 = vld [vmem:[%s3213_s5 + $0x2a8] sm:$0xf]  ;;  %v1707_v28 = vor.u32 %v2070_v21, %v1706_v20  ;;  %v2032_v21 = vld [vmem:[%s3213_s5 + $0x44] sm:$0xf] }
  0x39   :  { %401 = vmatpush.bf16.msrb.mxu1 %v1487_v56  ;;  %v1675_v56 = vor.u32 %v2059_v51, %v1672_v54  ;;  %v1560_v51 = vld [vmem:[%s3213_s5 + $0x54] sm:$0xf0]  ;;  %v1759_v54 = vor.u32 %v2080_v39, %v1756_v40  ;;  %v2105_v39 = vld [vmem:[%s3213_s5 + $0x288] sm:$0xf0] }
  0x3a   :  { %1135 = vmatpush.bf16.msrb.mxu2 %v1671_v55 }
  0x3b   :  { %1150 = vmatpush.bf16.msrb.mxu3 %v1839_v6 }
  0x3c   :  { %389 = vmatpush.bf16.msrb.mxu0 %v1415_v1  ;;  %v2101_v1 = vld [vmem:[%s3213_s5 + $0x26c] sm:$0xf] }
  0x3d   :  { %402 = vmatpush.bf16.msrb.mxu1 %v1479_v4  ;;  %v1647_v4 = vor.u32 %v2052_v60, %v1644_v61  ;;  %v1843_v10 = vor.u32 %v2101_v1, %v1840_v2  ;;  %v1530_v60 = vld [vmem:[%s3213_s5] sm:$0xf]  ;;  %v1932_v1 = vld [vmem:[%s3213_s5 + $0x334] sm:$0xf0] }
  0x3e   :  { %1136 = vmatpush.bf16.msrb.mxu2 %v1643_v3  ;;  %v2024_v3 = vld [vmem:[%s3213_s5 + $0x4] sm:$0xf]  ;;  %v1531_v11 = vor.u32 %v2027_v63, %v1530_v60  ;;  %v1935_v12 = vor.u32 %v2123_v0, %v1932_v1  ;;  %v1790_v0 = vld [vmem:[%s3213_s5 + $0x200] sm:$0xf]  ;;  %v2091_v1 = vld [vmem:[%s3213_s5 + $0x218] sm:$0xf0] }
  0x3f   :  { %1151 = vmatpush.bf16.msrb.mxu3 %v1811_v19  ;;  %v1904_v19 = vld [vmem:[%s3213_s5 + $0x2fc] sm:$0xf0] }
  0x40   :  { %390 = vmatpush.bf16.msrb.mxu0 %v1407_v13  ;;  %v43_v13 = vld [vmem:[%s3214_s2] sm:$0x3]  ;;  %v1907_v25 = vor.u32 %v2116_v18, %v1904_v19  ;;  %v2035_v19 = vld [vmem:[%s3213_s5 + $0x58] sm:$0xf0] }
  0x41   :  { %403 = vmatpush.bf16.msrb.mxu1 %v1471_v16  ;;  %v1615_v16 = vor.u32 %v2048_v7, %v1614_v5  ;;  %v45_v23 = vperm.slane %v43_v13, 0  ;;  %v46_v27 = vperm.slane %v43_v13, 1  ;;  %v1734_v5 = vld [vmem:[%s3213_s5 + $0x190] sm:$0xf]  ;;  %v2077_v7 = vld [vmem:[%s3213_s5 + $0x1a8] sm:$0xf0] }
  0x42   :  { %v1566_v18 = vld [vmem:[%s3213_s5 + $0x40] sm:$0xf] }
  0x43   :  { %1137 = vmatpush.bf16.msrb.mxu2 %v1615_v16  ;;  %1152 = vmatpush.bf16.msrb.mxu3 %v1783_v33  ;;  %v1735_v16 = vor.u32 %v2077_v7, %v1734_v5  ;;  %v2063_v33 = vld [vmem:[%s3213_s5 + $0x138] sm:$0xf0]  ;;  %v2042_v7 = vld [vmem:[%s3213_s5 + $0x90] sm:$0xf0]  ;;  %v1567_v20 = vor.u32 %v2035_v19, %v1566_v18  ;;  %v1686_v19 = vld [vmem:[%s3213_s5 + $0x128] sm:$0xf] }
  0x44   :  { %1159 = vmatpush.bf16.msra.mxu0 %v1731_v34  ;;  %v1754_v34 = vld [vmem:[%s3213_s5 + $0x1c0] sm:$0xf] }
  0x45   :  { %1172 = vmatpush.bf16.msra.mxu1 %v1955_v24  ;;  %v1815_v24 = vor.u32 %v2094_v14, %v1812_v15  ;;  %v1755_v53 = vor.u32 %v2083_v35, %v1754_v34  ;;  %v1902_v14 = vld [vmem:[%s3213_s5 + $0x2e0] sm:$0xf]  ;;  %v2119_v15 = vld [vmem:[%s3213_s5 + $0x2f8] sm:$0xf0]  ;;  %v2060_v34 = vld [vmem:[%s3213_s5 + $0x124] sm:$0xf] }
  0x46   :  { %v1680_v35 = vld [vmem:[%s3213_s5 + $0x13c] sm:$0xf0] }
  0x47   :  { %1138 = vmatpush.bf16.msrb.mxu2 %v1587_v30  ;;  %1153 = vmatpush.bf16.msrb.mxu3 %v1755_v53  ;;  %v2109_v30 = vld [vmem:[%s3213_s5 + $0x2ac] sm:$0xf]  ;;  %v2098_v53 = vld [vmem:[%s3213_s5 + $0x250] sm:$0xf0] }
  0x48   :  { %1160 = vmatpush.bf16.msra.mxu0 %v1703_v45  ;;  %v2034_v45 = vld [vmem:[%s3213_s5 + $0x50] sm:$0xf0] }
  0x49   :  { %1173 = vmatpush.bf16.msra.mxu1 %v1927_v32  ;;  %v1559_v57 = vor.u32 %v2034_v45, %v1558_v44  ;;  %v1650_v44 = vld [vmem:[%s3213_s5 + $0xe8] sm:$0xf]  ;;  %v2056_v45 = vld [vmem:[%s3213_s5 + $0x100] sm:$0xf0] }
  0x4b   :  { %1139 = vmatpush.bf16.msrb.mxu2 %v1559_v57 }
  0x4c   :  { %1161 = vmatpush.bf16.msra.mxu0 %v1675_v56  ;;  %v1959_v56 = vor.u32 %v2133_v43, %v1958_v41  ;;  %v1683_v41 = vor.u32 %v2060_v34, %v1680_v35  ;;  %v1848_v43 = vld [vmem:[%s3213_s5 + $0x28c] sm:$0xf0] }
  0x4d   :  { %1174 = vmatpush.bf16.msra.mxu1 %v1899_v48  ;;  %v1960_v48 = vld [vmem:[%s3213_s5 + $0x36c] sm:$0xf0] }
  0x4e   :  { %v1963_v61 = vor.u32 %v2130_v47, %v1960_v48  ;;  %v1652_v47 = vld [vmem:[%s3213_s5 + $0x104] sm:$0xf0] }
  0x4f   :  { %1140 = vmatpush.bf16.msrb.mxu2 %v1531_v11 }
  0x50   :  { %1162 = vmatpush.bf16.msra.mxu0 %v1647_v4  ;;  %v1532_v4 = vld [vmem:[%s3213_s5 + $0x1c] sm:$0xf0] }
  0x51   :  { %1175 = vmatpush.bf16.msra.mxu1 %v1871_v62  ;;  %v1563_v62 = vor.u32 %v2031_v50, %v1560_v51  ;;  %v1535_v13 = vor.u32 %v2024_v3, %v1532_v4  ;;  %v1651_v50 = vor.u32 %v2056_v45, %v1650_v44  ;;  %v2088_v3 = vld [vmem:[%s3213_s5 + $0x204] sm:$0xf]  ;;  %v1792_v4 = vld [vmem:[%s3213_s5 + $0x21c] sm:$0xf0] }
  0x52   :  { %v1795_v5 = vor.u32 %v2088_v3, %v1792_v4  ;;  %v1938_v45 = vld [vmem:[%s3213_s5 + $0x320] sm:$0xf] }
  0x53   :  { %v1714_v4 = vld [vmem:[%s3213_s5 + $0x160] sm:$0xf] }
  0x54   :  { %1163 = vmatpush.bf16.msra.mxu0 %v1619_v17  ;;  %v1739_v17 = vor.u32 %v2074_v8, %v1736_v9  ;;  %v2039_v9 = vld [vmem:[%s3213_s5 + $0x7c] sm:$0xf] }
  0x55   :  { %1176 = vmatpush.bf16.msra.mxu1 %v1843_v10  ;;  %v1931_v10 = vor.u32 %v2126_v59, %v1930_v58  ;;  %v1622_v58 = vld [vmem:[%s3213_s5 + $0xb0] sm:$0xf]  ;;  %v2049_v59 = vld [vmem:[%s3213_s5 + $0xc8] sm:$0xf0] }
  0x56   :  { %v1623_v60 = vor.u32 %v2049_v59, %v1622_v58  ;;  %v1744_v58 = vld [vmem:[%s3213_s5 + $0x1b4] sm:$0xf0] }
  0x58   :  { %1164 = vmatpush.bf16.msra.mxu0 %v1591_v31  ;;  %v1876_v31 = vld [vmem:[%s3213_s5 + $0x2c4] sm:$0xf0] }
  0x59   :  { %1177 = vmatpush.bf16.msra.mxu1 %v1815_v24  ;;  %v1903_v24 = vor.u32 %v2119_v15, %v1902_v14  ;;  %v2081_v15 = vld [vmem:[%s3213_s5 + $0x1cc] sm:$0xf] }
  0x5c   :  { %1165 = vmatpush.bf16.msra.mxu0 %v1563_v62  ;;  %v1624_v62 = vld [vmem:[%s3213_s5 + $0xcc] sm:$0xf0] }
  0x5d   :  { %1178 = vmatpush.bf16.msra.mxu1 %v1787_v38  ;;  %v1846_v38 = vld [vmem:[%s3213_s5 + $0x270] sm:$0xf] }
  0x5e   :  { %v1847_v48 = vor.u32 %v2105_v39, %v1846_v38  ;;  %v2134_v38 = vld [vmem:[%s3213_s5 + $0x370] sm:$0xf0]  ;;  %v2131_v39 = vld [vmem:[%s3213_s5 + $0x35c] sm:$0xf] }
  0x60   :  { %1166 = vmatpush.bf16.msra.mxu0 %v1535_v13  ;;  %v2084_v13 = vld [vmem:[%s3213_s5 + $0x1e0] sm:$0xf0] }
  0x61   :  { %1179 = vmatpush.bf16.msra.mxu1 %v1759_v54 }
  0xa0   :  { %v138_v32 = vpop.f32.mrf.mxu0 }
  0xa1   :  { %v139_v36 = vadd.f32 %v138_v32, %v45_v23  ;;  %v151_v37 = vpop.f32.mrf.mxu1  ;;  %v1708_v23 = vld [vmem:[%s3213_s5 + $0x174] sm:$0xf0]  ;;  %v1678_v32 = vld [vmem:[%s3213_s5 + $0x120] sm:$0xf] }
  0xa2   :  { %v152_v42 = vadd.f32 %v151_v37, %v46_v27  ;;  %v2112_v27 = vld [vmem:[%s3213_s5 + $0x2c0] sm:$0xf0]  ;;  %v1711_v29 = vor.u32 %v2067_v22, %v1708_v23  ;;  %v1879_v37 = vor.u32 %v2109_v30, %v1876_v31  ;;  %v1679_v40 = vor.u32 %v2063_v33, %v1678_v32  ;;  %v1568_v22 = vld [vmem:[%s3213_s5 + $0x5c] sm:$0xf0] }
  0xa3   :  { %v155_v46 = vmax.f32 %v139_v36, 0.0  ;;  %v1875_v36 = vor.u32 %v2112_v27, %v1874_v26  ;;  %v1571_v23 = vor.u32 %v2032_v21, %v1568_v22  ;;  %v2025_v27 = vld [vmem:[%s3213_s5 + $0xc] sm:$0xf]  ;;  %v191_v30 = vld [vmem:[%s3215_s4] sm:$0x3] }
  0xa4   :  { %v156_v49 = vmax.f32 %v152_v42, 0.0  ;;  %v2102_v42 = vld [vmem:[%s3213_s5 + $0x274] sm:$0xf]  ;;  %v194_v31 = vperm.slane %v191_v30, 1  ;;  %v193_v35 = vperm.slane %v191_v30, 0 }
  0xa5   :  { %v157_v52 = vpack.c.bf16 %v155_v46, %v155_v46  ;;  %v2053_v46 = vld [vmem:[%s3213_s5 + $0xec] sm:$0xf]  ;;  %v1688_v22 = vld [vmem:[%s3213_s5 + $0x144] sm:$0xf0] }
  0xa6   :  { %v158_v55 = vpack.c.bf16 %v156_v49, %v156_v49  ;;  %v1851_v49 = vor.u32 %v2102_v42, %v1848_v43  ;;  %v1655_v51 = vor.u32 %v2053_v46, %v1652_v47  ;;  %v2061_v21 = vld [vmem:[%s3213_s5 + $0x12c] sm:$0xf] }
  0xa7   :  { %365 = vmatmul.bf16.vlgmr.msra.gmra.mxu2 %v157_v52  ;;  %391 = vmatmul.bf16.vlgmr.msrb.gmra.mxu0 %v157_v52  ;;  %v1818_v52 = vld [vmem:[%s3213_s5 + $0x238] sm:$0xf]  ;;  %v1691_v30 = vor.u32 %v2061_v21, %v1688_v22  ;;  %v1548_v21 = vld [vmem:[%s3213_s5 + $0x2c] sm:$0xf0]  ;;  %v1750_v22 = vld [vmem:[%s3213_s5 + $0x1a0] sm:$0xf] }
  0xa8   :  { %378 = vmatmul.bf16.vlgmr.msra.gmra.mxu3 %v158_v55  ;;  %404 = vmatmul.bf16.vlgmr.msrb.gmra.mxu1 %v158_v55  ;;  %v140_v2 = vpop.f32.mrf.mxu0  ;;  %v1819_v54 = vor.u32 %v2098_v53, %v1818_v52  ;;  %v2095_v55 = vld [vmem:[%s3213_s5 + $0x23c] sm:$0xf]  ;;  %v1742_v53 = vld [vmem:[%s3213_s5 + $0x198] sm:$0xf] }
  0xa9   :  { %v153_v6 = vpop.f32.mrf.mxu1  ;;  %1198 = vmatpush.bf16.msra.mxu3 %v1959_v56  ;;  %1224 = vmatpush.bf16.msrb.mxu1 %v1963_v61  ;;  %v1820_v56 = vld [vmem:[%s3213_s5 + $0x254] sm:$0xf0]  ;;  %v2046_v61 = vld [vmem:[%s3213_s5 + $0xb4] sm:$0xf]  ;;  %v1791_v2 = vor.u32 %v2091_v1, %v1790_v0  ;;  %v2117_v0 = vld [vmem:[%s3213_s5 + $0x2ec] sm:$0xf] }
  0xaa   :  { %1185 = vmatpush.bf16.msra.mxu2 %v1735_v16  ;;  %1211 = vmatpush.bf16.msrb.mxu0 %v1739_v17  ;;  %v1823_v57 = vor.u32 %v2095_v55, %v1820_v56  ;;  %v1627_v63 = vor.u32 %v2046_v61, %v1624_v62  ;;  %v1594_v6 = vld [vmem:[%s3213_s5 + $0x78] sm:$0xf]  ;;  %v1764_v16 = vld [vmem:[%s3213_s5 + $0x1e4] sm:$0xf0]  ;;  %v2078_v56 = vld [vmem:[%s3213_s5 + $0x1b0] sm:$0xf0] }
  0xab   :  { %v1595_v8 = vor.u32 %v2042_v7, %v1594_v6  ;;  %v1767_v17 = vor.u32 %v2081_v15, %v1764_v16  ;;  %v1910_v61 = vld [vmem:[%s3213_s5 + $0x2e8] sm:$0xf]  ;;  %v2120_v62 = vld [vmem:[%s3213_s5 + $0x300] sm:$0xf0]  ;;  %v2071_v6 = vld [vmem:[%s3213_s5 + $0x178] sm:$0xf0] }
  0xac   :  { %v1912_v1 = vld [vmem:[%s3213_s5 + $0x304] sm:$0xf0]  ;;  %v2068_v7 = vld [vmem:[%s3213_s5 + $0x164] sm:$0xf]  ;;  %v2110_v15 = vld [vmem:[%s3213_s5 + $0x2b4] sm:$0xf] }
  0xad   :  { %1199 = vmatpush.bf16.msra.mxu3 %v1931_v10  ;;  %1225 = vmatpush.bf16.msrb.mxu1 %v1935_v12  ;;  %v1596_v10 = vld [vmem:[%s3213_s5 + $0x94] sm:$0xf0]  ;;  %v1762_v12 = vld [vmem:[%s3213_s5 + $0x1c8] sm:$0xf]  ;;  %v1884_v16 = vld [vmem:[%s3213_s5 + $0x2cc] sm:$0xf0] }
  0xae   :  { %1186 = vmatpush.bf16.msra.mxu2 %v1707_v28  ;;  %1212 = vmatpush.bf16.msrb.mxu0 %v1711_v29  ;;  %v1599_v11 = vor.u32 %v2039_v9, %v1596_v10  ;;  %v1763_v14 = vor.u32 %v2084_v13, %v1762_v12  ;;  %v1540_v28 = vld [vmem:[%s3213_s5 + $0x24] sm:$0xf0]  ;;  %v1911_v10 = vor.u32 %v2120_v62, %v1910_v61  ;;  %v1882_v12 = vld [vmem:[%s3213_s5 + $0x2b0] sm:$0xf] }
  0xaf   :  { %v1543_v29 = vor.u32 %v2025_v27, %v1540_v28  ;;  %v2103_v27 = vld [vmem:[%s3213_s5 + $0x27c] sm:$0xf]  ;;  %v1856_v28 = vld [vmem:[%s3213_s5 + $0x294] sm:$0xf0]  ;;  %v1770_v62 = vld [vmem:[%s3213_s5 + $0x1d0] sm:$0xf] }
  0xb1   :  { %1200 = vmatpush.bf16.msra.mxu3 %v1903_v24  ;;  %1226 = vmatpush.bf16.msrb.mxu1 %v1907_v25  ;;  %v1538_v24 = vld [vmem:[%s3213_s5 + $0x8] sm:$0xf]  ;;  %v2028_v25 = vld [vmem:[%s3213_s5 + $0x20] sm:$0xf0] }
  0xb2   :  { %1187 = vmatpush.bf16.msra.mxu2 %v1679_v40  ;;  %1213 = vmatpush.bf16.msrb.mxu0 %v1683_v41  ;;  %v1539_v26 = vor.u32 %v2028_v25, %v1538_v24  ;;  %v1968_v40 = vld [vmem:[%s3213_s5 + $0x374] sm:$0xf0]  ;;  %v1887_v24 = vor.u32 %v2110_v15, %v1884_v16  ;;  %v1946_v16 = vld [vmem:[%s3213_s5 + $0x328] sm:$0xf] }
  0xb3   :  { %v1971_v44 = vor.u32 %v2131_v39, %v1968_v40  ;;  %v1854_v25 = vld [vmem:[%s3213_s5 + $0x278] sm:$0xf]  ;;  %v2096_v39 = vld [vmem:[%s3213_s5 + $0x244] sm:$0xf]  ;;  %v1828_v40 = vld [vmem:[%s3213_s5 + $0x25c] sm:$0xf0] }
  0xb5   :  { %1201 = vmatpush.bf16.msra.mxu3 %v1875_v36  ;;  %1227 = vmatpush.bf16.msrb.mxu1 %v1879_v37  ;;  %v1966_v36 = vld [vmem:[%s3213_s5 + $0x358] sm:$0xf] }
  0xb6   :  { %1188 = vmatpush.bf16.msra.mxu2 %v1651_v50  ;;  %1214 = vmatpush.bf16.msrb.mxu0 %v1655_v51  ;;  %v1967_v43 = vor.u32 %v2134_v38, %v1966_v36  ;;  %v2124_v50 = vld [vmem:[%s3213_s5 + $0x324] sm:$0xf]  ;;  %v1940_v51 = vld [vmem:[%s3213_s5 + $0x33c] sm:$0xf0]  ;;  %v1859_v36 = vor.u32 %v2103_v27, %v1856_v28  ;;  %v2099_v38 = vld [vmem:[%s3213_s5 + $0x258] sm:$0xf0] }
  0xb7   :  { %v1918_v27 = vld [vmem:[%s3213_s5 + $0x2f0] sm:$0xf]  ;;  %v2121_v28 = vld [vmem:[%s3213_s5 + $0x308] sm:$0xf0] }
  0xb9   :  { %1202 = vmatpush.bf16.msra.mxu3 %v1847_v48  ;;  %1228 = vmatpush.bf16.msrb.mxu1 %v1851_v49  ;;  %v2127_v49 = vld [vmem:[%s3213_s5 + $0x338] sm:$0xf0] }
  0xba   :  { %1189 = vmatpush.bf16.msra.mxu2 %v1623_v60  ;;  %1215 = vmatpush.bf16.msrb.mxu0 %v1627_v63  ;;  %v1939_v59 = vor.u32 %v2127_v49, %v1938_v45  ;;  %v1943_v60 = vor.u32 %v2124_v50, %v1940_v51  ;;  %v2047_v45 = vld [vmem:[%s3213_s5 + $0xbc] sm:$0xf]  ;;  %v1831_v49 = vor.u32 %v2096_v39, %v1828_v40  ;;  %v1798_v50 = vld [vmem:[%s3213_s5 + $0x208] sm:$0xf]  ;;  %v2092_v51 = vld [vmem:[%s3213_s5 + $0x220] sm:$0xf0] }
  0xbb   :  { %v1862_v39 = vld [vmem:[%s3213_s5 + $0x280] sm:$0xf]  ;;  %v2107_v40 = vld [vmem:[%s3213_s5 + $0x298] sm:$0xf0] }
  0xbd   :  { %1203 = vmatpush.bf16.msra.mxu3 %v1819_v54  ;;  %1229 = vmatpush.bf16.msrb.mxu1 %v1823_v57  ;;  %v2075_v57 = vld [vmem:[%s3213_s5 + $0x19c] sm:$0xf] }
  0xbe   :  { %1190 = vmatpush.bf16.msra.mxu2 %v1595_v8  ;;  %1216 = vmatpush.bf16.msrb.mxu0 %v1599_v11  ;;  %v1747_v3 = vor.u32 %v2075_v57, %v1744_v58  ;;  %v1716_v8 = vld [vmem:[%s3213_s5 + $0x17c] sm:$0xf0]  ;;  %v1915_v11 = vor.u32 %v2117_v0, %v1912_v1  ;;  %v2043_v57 = vld [vmem:[%s3213_s5 + $0x98] sm:$0xf0]  ;;  %v2040_v58 = vld [vmem:[%s3213_s5 + $0x84] sm:$0xf] }
  0xbf   :  { %v1719_v18 = vor.u32 %v2068_v7, %v1716_v8  ;;  %v2082_v0 = vld [vmem:[%s3213_s5 + $0x1d4] sm:$0xf]  ;;  %v1772_v1 = vld [vmem:[%s3213_s5 + $0x1ec] sm:$0xf0]  ;;  %v1574_v7 = vld [vmem:[%s3213_s5 + $0x48] sm:$0xf] }
  0xc0   :  { %v2036_v8 = vld [vmem:[%s3213_s5 + $0x60] sm:$0xf0] }
  0xc1   :  { %1204 = vmatpush.bf16.msra.mxu3 %v1791_v2  ;;  %1230 = vmatpush.bf16.msrb.mxu1 %v1795_v5  ;;  %v1743_v2 = vor.u32 %v2078_v56, %v1742_v53  ;;  %v1800_v53 = vld [vmem:[%s3213_s5 + $0x224] sm:$0xf0]  ;;  %v1602_v56 = vld [vmem:[%s3213_s5 + $0x80] sm:$0xf] }
  0xc2   :  { %1191 = vmatpush.bf16.msra.mxu2 %v1567_v20  ;;  %1217 = vmatpush.bf16.msrb.mxu0 %v1571_v23  ;;  %v2064_v20 = vld [vmem:[%s3213_s5 + $0x140] sm:$0xf0] }
  0xc5   :  { %1205 = vmatpush.bf16.msra.mxu3 %v1763_v14  ;;  %1231 = vmatpush.bf16.msrb.mxu1 %v1767_v17  ;;  %v2113_v14 = vld [vmem:[%s3213_s5 + $0x2c8] sm:$0xf0]  ;;  %v1715_v17 = vor.u32 %v2071_v6, %v1714_v4  ;;  %v1974_v4 = vld [vmem:[%s3213_s5 + $0x360] sm:$0xf]  ;;  %v2135_v6 = vld [vmem:[%s3213_s5 + $0x378] sm:$0xf0] }
  0xc6   :  { %1192 = vmatpush.bf16.msra.mxu2 %v1539_v26  ;;  %1218 = vmatpush.bf16.msrb.mxu0 %v1543_v29  ;;  %v1883_v23 = vor.u32 %v2113_v14, %v1882_v12  ;;  %v2106_v26 = vld [vmem:[%s3213_s5 + $0x290] sm:$0xf0]  ;;  %v1687_v29 = vor.u32 %v2064_v20, %v1686_v19  ;;  %v1775_v12 = vor.u32 %v2082_v0, %v1772_v1  ;;  %v2029_v19 = vld [vmem:[%s3213_s5 + $0x28] sm:$0xf0]  ;;  %v1554_v1 = vld [vmem:[%s3213_s5 + $0x18] sm:$0xf] }
  0xc7   :  { %v1575_v14 = vor.u32 %v2036_v8, %v1574_v7  ;;  %v2026_v20 = vld [vmem:[%s3213_s5 + $0x14] sm:$0xf] }
 0x124   :  { %v392_v32 = vpop.f32.mrf.mxu0 }
 0x125   :  { %v393_v33 = vadd.f32 %v392_v32, %v194_v31  ;;  %v405_v34 = vpop.f32.mrf.mxu1  ;;  %v1658_v31 = vld [vmem:[%s3213_s5 + $0xf0] sm:$0xf]  ;;  %v2057_v32 = vld [vmem:[%s3213_s5 + $0x108] sm:$0xf0] }
 0x127   :  { %v406_v37 = vadd.f32 %v405_v34, %v393_v33  ;;  %v2054_v33 = vld [vmem:[%s3213_s5 + $0xf4] sm:$0xf]  ;;  %v1660_v34 = vld [vmem:[%s3213_s5 + $0x10c] sm:$0xf0] }
 0x129   :  { %v410_v41 = vmax.f32 %v406_v37, 0.0  ;;  %v1826_v37 = vld [vmem:[%s3213_s5 + $0x240] sm:$0xf] }
 0x12a   :  { %v366_v42 = vpop.f32.mrf.mxu2 }
 0x12b   :  { %v2886_v46 = vpack.c.bf16 %v410_v41, %v410_v41  ;;  %v367_v47 = vadd.f32 %v366_v42, %v193_v35  ;;  %v379_v48 = vpop.f32.mrf.mxu3  ;;  %v1855_v35 = vor.u32 %v2106_v26, %v1854_v25  ;;  %v1659_v41 = vor.u32 %v2057_v32, %v1658_v31  ;;  %v2072_v31 = vld [vmem:[%s3213_s5 + $0x180] sm:$0xf0] }
 0x12c   :  { %v394_v52 = vpop.f32.mrf.mxu0  ;;  %v1663_v42 = vor.u32 %v2054_v33, %v1660_v34  ;;  %v1551_v26 = vor.u32 %v2026_v20, %v1548_v21  ;;  %v1919_v32 = vor.u32 %v2121_v28, %v1918_v27  ;;  %v1890_v33 = vld [vmem:[%s3213_s5 + $0x2b8] sm:$0xf]  ;;  %v2114_v34 = vld [vmem:[%s3213_s5 + $0x2d0] sm:$0xf0] }
 0x12d   :  { %v380_v54 = vadd.f32 %v379_v48, %v367_v47  ;;  %v407_v55 = vpop.f32.mrf.mxu1  ;;  %1154 = vmatmul.bf16.vlgmr.msrb.gmra.mxu3 %v2886_v46  ;;  %1180 = vmatmul.bf16.vlgmr.msra.gmra.mxu1 %v2886_v46  ;;  %v1632_v47 = vld [vmem:[%s3213_s5 + $0xd4] sm:$0xf0]  ;;  %v1827_v48 = vor.u32 %v2099_v38, %v1826_v37  ;;  %v2089_v52 = vld [vmem:[%s3213_s5 + $0x20c] sm:$0xf]  ;;  %v1891_v38 = vor.u32 %v2114_v34, %v1890_v33 }
 0x12e   :  { %1250 = vmatpush.bf16.msrb.mxu3 %v1967_v43  ;;  %1276 = vmatpush.bf16.msra.mxu1 %v1971_v44  ;;  %v1630_v43 = vld [vmem:[%s3213_s5 + $0xb8] sm:$0xf]  ;;  %v2050_v44 = vld [vmem:[%s3213_s5 + $0xd0] sm:$0xf0]  ;;  %v1635_v55 = vor.u32 %v2047_v45, %v1632_v47  ;;  %v1803_v61 = vor.u32 %v2089_v52, %v1800_v53  ;;  %v2065_v37 = vld [vmem:[%s3213_s5 + $0x148] sm:$0xf0] }
 0x12f   :  { %v409_v63 = vmax.f32 %v380_v54, 0.0  ;;  %v1631_v54 = vor.u32 %v2050_v44, %v1630_v43  ;;  %v2058_v43 = vld [vmem:[%s3213_s5 + $0x110] sm:$0xf0]  ;;  %v1863_v44 = vor.u32 %v2107_v40, %v1862_v39  ;;  %v1834_v45 = vld [vmem:[%s3213_s5 + $0x248] sm:$0xf] }
 0x130   :  { %v2100_v47 = vld [vmem:[%s3213_s5 + $0x260] sm:$0xf0]  ;;  %v1806_v52 = vld [vmem:[%s3213_s5 + $0x210] sm:$0xf]  ;;  %v2093_v53 = vld [vmem:[%s3213_s5 + $0x228] sm:$0xf0] }
 0x131   :  { %v2926_v5 = vpack.c.bf16 %v409_v63, %v409_v63  ;;  %v2085_v63 = vld [vmem:[%s3213_s5 + $0x1e8] sm:$0xf0] }
 0x132   :  { %1251 = vmatpush.bf16.msrb.mxu3 %v1939_v59  ;;  %v368_v9 = vpop.f32.mrf.mxu2  ;;  %1277 = vmatpush.bf16.msra.mxu1 %v1943_v60  ;;  %v1604_v59 = vld [vmem:[%s3213_s5 + $0x9c] sm:$0xf0]  ;;  %v1799_v60 = vor.u32 %v2092_v51, %v1798_v50  ;;  %v2051_v50 = vld [vmem:[%s3213_s5 + $0xd8] sm:$0xf0]  ;;  %v1835_v51 = vor.u32 %v2100_v47, %v1834_v45 }
 0x133   :  { %v381_v13 = vpop.f32.mrf.mxu3  ;;  %1141 = vmatmul.bf16.vlgmr.msrb.gmra.mxu2 %v2926_v5  ;;  %1167 = vmatmul.bf16.vlgmr.msra.gmra.mxu0 %v2926_v5  ;;  %v2033_v9 = vld [vmem:[%s3213_s5 + $0x4c] sm:$0xf] }
 0x134   :  { %1237 = vmatpush.bf16.msrb.mxu2 %v1743_v2  ;;  %1263 = vmatpush.bf16.msra.mxu0 %v1747_v3  ;;  %v1603_v2 = vor.u32 %v2043_v57, %v1602_v56  ;;  %v1607_v3 = vor.u32 %v2040_v58, %v1604_v59  ;;  %v1975_v13 = vor.u32 %v2135_v6, %v1974_v4  ;;  %v2044_v56 = vld [vmem:[%s3213_s5 + $0xa0] sm:$0xf0]  ;;  %v1778_v58 = vld [vmem:[%s3213_s5 + $0x1d8] sm:$0xf]  ;;  %v2086_v59 = vld [vmem:[%s3213_s5 + $0x1f0] sm:$0xf0] }
 0x135   :  { %v1807_v57 = vor.u32 %v2093_v53, %v1806_v52  ;;  %v3180_v6 = vld [vmem:[%s3216_s6] sm:$0xff] }
 0x136   :  { %1252 = vmatpush.bf16.msrb.mxu3 %v1911_v10  ;;  %1278 = vmatpush.bf16.msra.mxu1 %v1915_v11  ;;  %v1576_v10 = vld [vmem:[%s3213_s5 + $0x64] sm:$0xf0]  ;;  %v1771_v11 = vor.u32 %v2085_v63, %v1770_v62  ;;  %v2037_v62 = vld [vmem:[%s3213_s5 + $0x68] sm:$0xf0]  ;;  %v1779_v63 = vor.u32 %v2086_v59, %v1778_v58  ;;  %v544_v7 = vperm.slane %v3180_v6, 1  ;;  %v545_v27 = vperm.slane %v3180_v6, 2 }
 0x137   :  { %v1579_v15 = vor.u32 %v2033_v9, %v1576_v10 }
 0x138   :  { %1238 = vmatpush.bf16.msrb.mxu2 %v1715_v17  ;;  %1264 = vmatpush.bf16.msra.mxu0 %v1719_v18  ;;  %v2128_v17 = vld [vmem:[%s3213_s5 + $0x340] sm:$0xf0]  ;;  %v1546_v18 = vld [vmem:[%s3213_s5 + $0x10] sm:$0xf] }
 0x139   :  { %v1547_v25 = vor.u32 %v2029_v19, %v1546_v18  ;;  %v546_v19 = vperm.slane %v3180_v6, 3 }
 0x13a   :  { %1253 = vmatpush.bf16.msrb.mxu3 %v1883_v23  ;;  %1279 = vmatpush.bf16.msra.mxu1 %v1887_v24  ;;  %v2079_v23 = vld [vmem:[%s3213_s5 + $0x1b8] sm:$0xf0]  ;;  %v1947_v24 = vor.u32 %v2128_v17, %v1946_v16 }
 0x13c   :  { %1239 = vmatpush.bf16.msrb.mxu2 %v1687_v29  ;;  %1265 = vmatpush.bf16.msra.mxu0 %v1691_v30  ;;  %v1751_v29 = vor.u32 %v2079_v23, %v1750_v22  ;;  %v1722_v30 = vld [vmem:[%s3213_s5 + $0x168] sm:$0xf] }
 0x13d   :  { %1206 = vmatmul.bf16.vlgmr.msra.gmra.mxu3 %v2886_v46  ;;  %1232 = vmatmul.bf16.vlgmr.msrb.gmra.mxu1 %v2886_v46 }
 0x13e   :  { %1254 = vmatpush.bf16.msrb.mxu3 %v1855_v35  ;;  %1280 = vmatpush.bf16.msra.mxu1 %v1859_v36  ;;  %v1723_v35 = vor.u32 %v2072_v31, %v1722_v30  ;;  %v1694_v36 = vld [vmem:[%s3213_s5 + $0x130] sm:$0xf] }
 0x140   :  { %1240 = vmatpush.bf16.msrb.mxu2 %v1659_v41  ;;  %1266 = vmatpush.bf16.msra.mxu0 %v1663_v42  ;;  %v1695_v41 = vor.u32 %v2065_v37, %v1694_v36  ;;  %v1666_v42 = vld [vmem:[%s3213_s5 + $0xf8] sm:$0xf]  ;;  %v548_v36 = vperm.slane %v3180_v6, 5 }
 0x142   :  { %1255 = vmatpush.bf16.msrb.mxu3 %v1827_v48  ;;  %1281 = vmatpush.bf16.msra.mxu1 %v1831_v49  ;;  %v1667_v48 = vor.u32 %v2058_v43, %v1666_v42  ;;  %v1638_v49 = vld [vmem:[%s3213_s5 + $0xc0] sm:$0xf]  ;;  %v547_v42 = vperm.slane %v3180_v6, 4 }
 0x143   :  { %1193 = vmatmul.bf16.vlgmr.msra.gmra.mxu2 %v2926_v5  ;;  %1219 = vmatmul.bf16.vlgmr.msrb.gmra.mxu0 %v2926_v5 }
 0x144   :  { %1241 = vmatpush.bf16.msrb.mxu2 %v1631_v54  ;;  %1267 = vmatpush.bf16.msra.mxu0 %v1635_v55  ;;  %v1639_v54 = vor.u32 %v2051_v50, %v1638_v49  ;;  %v1610_v55 = vld [vmem:[%s3213_s5 + $0x88] sm:$0xf] }
 0x146   :  { %1256 = vmatpush.bf16.msrb.mxu3 %v1799_v60  ;;  %1282 = vmatpush.bf16.msra.mxu1 %v1803_v61  ;;  %v1611_v60 = vor.u32 %v2044_v56, %v1610_v55  ;;  %v1582_v61 = vld [vmem:[%s3213_s5 + $0x50] sm:$0xf] }
 0x147   :  { %v1583_v0 = vor.u32 %v2037_v62, %v1582_v61 }
 0x148   :  { %1242 = vmatpush.bf16.msrb.mxu2 %v1603_v2  ;;  %1268 = vmatpush.bf16.msra.mxu0 %v1607_v3  ;;  %v2030_v2 = vld [vmem:[%s3213_s5 + $0x30] sm:$0xf0] }
 0x149   :  { %v1555_v3 = vor.u32 %v2030_v2, %v1554_v1 }
 0x14a   :  { %1257 = vmatpush.bf16.msrb.mxu3 %v1771_v11  ;;  %1283 = vmatpush.bf16.msra.mxu1 %v1775_v12 }
 0x14c   :  { %1243 = vmatpush.bf16.msrb.mxu2 %v1575_v14  ;;  %1269 = vmatpush.bf16.msra.mxu0 %v1579_v15 }
 0x14d   :  { %1258 = vmatmul.bf16.vlgmr.msrb.gmra.mxu3 %v2886_v46  ;;  %1284 = vmatmul.bf16.vlgmr.msra.gmra.mxu1 %v2886_v46 }
 0x14e   :  { %1302 = vmatpush.bf16.msra.mxu3 %v1975_v13  ;;  %v543_v13 = vperm.slane %v3180_v6, 0 }
 0x150   :  { %1244 = vmatpush.bf16.msrb.mxu2 %v1547_v25  ;;  %1270 = vmatpush.bf16.msra.mxu0 %v1551_v26 }
 0x152   :  { %1303 = vmatpush.bf16.msra.mxu3 %v1947_v24 }
 0x153   :  { %1245 = vmatmul.bf16.vlgmr.msrb.gmra.mxu2 %v2926_v5  ;;  %1271 = vmatmul.bf16.vlgmr.msra.gmra.mxu0 %v2926_v5 }
 0x154   :  { %1289 = vmatpush.bf16.msra.mxu2 %v1751_v29 }
 0x156   :  { %1304 = vmatpush.bf16.msra.mxu3 %v1919_v32 }
 0x158   :  { %1290 = vmatpush.bf16.msra.mxu2 %v1723_v35 }
 0x15a   :  { %1305 = vmatpush.bf16.msra.mxu3 %v1891_v38 }
 0x15c   :  { %1291 = vmatpush.bf16.msra.mxu2 %v1695_v41 }
 0x15e   :  { %1306 = vmatpush.bf16.msra.mxu3 %v1863_v44 }
 0x160   :  { %1292 = vmatpush.bf16.msra.mxu2 %v1667_v48 }
 0x162   :  { %1307 = vmatpush.bf16.msra.mxu3 %v1835_v51 }
 0x164   :  { %1293 = vmatpush.bf16.msra.mxu2 %v1639_v54  ;;  %v549_v54 = vperm.slane %v3180_v6, 6 }
 0x166   :  { %1308 = vmatpush.bf16.msra.mxu3 %v1807_v57 }
 0x168   :  { %1294 = vmatpush.bf16.msra.mxu2 %v1611_v60 }
 0x16a   :  { %1309 = vmatpush.bf16.msra.mxu3 %v1779_v63 }
 0x16c   :  { %1295 = vmatpush.bf16.msra.mxu2 %v1583_v0 }
 0x16d   :  { %1310 = vmatmul.bf16.vlgmr.msra.gmra.mxu3 %v2886_v46 }
 0x170   :  { %1296 = vmatpush.bf16.msra.mxu2 %v1555_v3 }
 0x173   :  { %1297 = vmatmul.bf16.vlgmr.msra.gmra.mxu2 %v2926_v5 }
 0x1aa   :  { %v1181_v4 = vpop.f32.mrf.mxu1 }
 0x1b0   :  { %v1155_v8 = vpop.f32.mrf.mxu3  ;;  %v1168_v9 = vpop.f32.mrf.mxu0 }
 0x1b1   :  { %v1169_v10 = vadd.f32 %v1168_v9, %v544_v7 }
 0x1b2   :  { %v1183_v11 = vpop.f32.mrf.mxu1 }
 0x1b3   :  { %v1182_v12 = vadd.f32 %v1181_v4, %v1169_v10 }
 0x1b5   :  { %2136 = vtanh.f32 %v1182_v12 }
 0x1b6   :  { %v1142_v46 = vpop.f32.mrf.mxu2 }
 0x1b7   :  { %v1143_v14 = vadd.f32 %v1142_v46, %v543_v13 }
 0x1b8   :  { %v1157_v15 = vpop.f32.mrf.mxu3  ;;  %v1170_v5 = vpop.f32.mrf.mxu0 }
 0x1b9   :  { %v1156_v16 = vadd.f32 %v1155_v8, %v1143_v14 }
 0x1ba   :  { %v1233_v17 = vpop.f32.mrf.mxu1 }
 0x1bb   :  { %v2137_v18 = vpop.eup %2136  ;;  %2138 = vtanh.f32 %v1156_v16 }
 0x1bc   :  { %1326 = vst [vmem:[%s3217_s7 + $0x8] sm:$0xff] %v2137_v18 }
 0x1be   :  { %v1144_v20 = vpop.f32.mrf.mxu2 }
 0x1c0   :  { %v1207_v21 = vpop.f32.mrf.mxu3  ;;  %v1220_v22 = vpop.f32.mrf.mxu0 }
 0x1c1   :  { %v2139_v23 = vpop.eup %2138  ;;  %v1221_v24 = vadd.f32 %v1220_v22, %v546_v19 }
 0x1c2   :  { %1325 = vst [vmem:[%s3217_s7] sm:$0xff] %v2139_v23  ;;  %v1235_v25 = vpop.f32.mrf.mxu1 }
 0x1c3   :  { %v1234_v26 = vadd.f32 %v1233_v17, %v1221_v24 }
 0x1c5   :  { %2140 = vtanh.f32 %v1234_v26 }
 0x1c6   :  { %v1194_v28 = vpop.f32.mrf.mxu2 }
 0x1c7   :  { %v1195_v29 = vadd.f32 %v1194_v28, %v545_v27 }
 0x1c8   :  { %v1209_v30 = vpop.f32.mrf.mxu3  ;;  %v1222_v31 = vpop.f32.mrf.mxu0 }
 0x1c9   :  { %v1208_v32 = vadd.f32 %v1207_v21, %v1195_v29 }
 0x1ca   :  { %v1285_v33 = vpop.f32.mrf.mxu1 }
 0x1cb   :  { %v2141_v34 = vpop.eup %2140  ;;  %2142 = vtanh.f32 %v1208_v32 }
 0x1cc   :  { %1328 = vst [vmem:[%s3217_s7 + $0x18] sm:$0xff] %v2141_v34 }
 0x1ce   :  { %v1196_v35 = vpop.f32.mrf.mxu2 }
 0x1d0   :  { %v1259_v37 = vpop.f32.mrf.mxu3  ;;  %v1272_v39 = vpop.f32.mrf.mxu0 }
 0x1d1   :  { %v2143_v38 = vpop.eup %2142  ;;  %v1273_v40 = vadd.f32 %v1272_v39, %v548_v36 }
 0x1d2   :  { %1327 = vst [vmem:[%s3217_s7 + $0x10] sm:$0xff] %v2143_v38  ;;  %v1287_v41 = vpop.f32.mrf.mxu1 }
 0x1d3   :  { %v1286_v43 = vadd.f32 %v1285_v33, %v1273_v40 }
 0x1d5   :  { %2144 = vtanh.f32 %v1286_v43 }
 0x1d6   :  { %v1246_v44 = vpop.f32.mrf.mxu2 }
 0x1d7   :  { %v1247_v45 = vadd.f32 %v1246_v44, %v547_v42 }
 0x1d8   :  { %v1261_v47 = vpop.f32.mrf.mxu3  ;;  %v1274_v49 = vpop.f32.mrf.mxu0 }
 0x1d9   :  { %v1260_v48 = vadd.f32 %v1259_v37, %v1247_v45 }
 0x1db   :  { %2146 = vtanh.f32 %v1260_v48  ;;  %v2145_v50 = vpop.eup %2144 }
 0x1dc   :  { %1330 = vst [vmem:[%s3217_s7 + $0x28] sm:$0xff] %v2145_v50 }
 0x1de   :  { %v1248_v51 = vpop.f32.mrf.mxu2 }
 0x1e1   :  { %v2147_v52 = vpop.eup %2146 }
 0x1e2   :  { %1329 = vst [vmem:[%s3217_s7 + $0x20] sm:$0xff] %v2147_v52 }
 0x1f0   :  { %v1311_v53 = vpop.f32.mrf.mxu3 }
 0x1f6   :  { %v1298_v55 = vpop.f32.mrf.mxu2 }
 0x1f7   :  { %v1299_v56 = vadd.f32 %v1298_v55, %v549_v54 }
 0x1f8   :  { %v1313_v57 = vpop.f32.mrf.mxu3 }
 0x1f9   :  { %v1312_v58 = vadd.f32 %v1311_v53, %v1299_v56 }
 0x1fb   :  { %2148 = vtanh.f32 %v1312_v58 }
 0x1fe   :  { %v1300_v59 = vpop.f32.mrf.mxu2 }
 0x201   :  { %v2149_v60 = vpop.eup %2148 }
 0x202   :  { %1331 = vst [vmem:[%s3217_s7 + $0x30] sm:$0xff] %v2149_v60 }

</bundles_post_ra>
